<compile_context>
chip_gen: v7x
topology: tpu7x:2x2x1
jax: 0.10.0
libtpu: 0.0.40
codegen_flags: <defaults>
</compile_context>

<pallas_src>
import jax
import jax.numpy as jnp
from jax.experimental import pallas as pl
from jax.experimental.pallas import tpu as pltpu


NCORES = 2       # partial-sum split across TensorCores (free on 1-TC chips)
TB_MAX = 512     # max batch rows per tile (multiple of 8)


def _round_up(x, m):
    return ((x + m - 1) // m) * m


def _centerloss_kernel(feat_ref, lbl_ref, cent_ref, out_ref):
    j = pl.program_id(1)

    @pl.when(j == 0)
    def _init():
        out_ref[...] = jnp.zeros_like(out_ref)

    feat = feat_ref[...].astype(jnp.float32)            # (TB, Dp)
    cent = cent_ref[...].astype(jnp.float32)            # (Cp, Dp) resident
    lbl = lbl_ref[...]                                  # (TB, 1) int32

    tb, dp = feat.shape
    cp = cent.shape[0]

    # One-hot gather on the (otherwise idle) MXU: padded labels are -1 and
    # never match, so their gathered center row is exactly zero.
    class_ids = jax.lax.broadcasted_iota(jnp.int32, (tb, cp), 1)
    one_hot = (lbl == class_ids).astype(jnp.float32)    # (TB, Cp)
    gathered = jnp.dot(one_hot, cent, preferred_element_type=jnp.float32)

    d = feat - gathered
    sq = d * d                                          # (TB, Dp)

    # Fold the TB rows into the lane-dense (8, Dp) resident output block
    # with pure-VPU elementwise adds (sublane-split reshape is layout-free).
    out_ref[...] += jnp.sum(sq.reshape(tb // 8, 8, dp), axis=0)


def center_loss(feature, label, centers, batch_size):
    """Pallas equivalent of CenterlossFunc.forward."""
    B, D = feature.shape
    C, Dc = centers.shape
    assert D == Dc

    Dp = _round_up(D, 128)                 # lane-align the feature dim
    Cp = _round_up(C, 128)                 # MXU-friendly contracting dim
    TB = min(TB_MAX, _round_up(B, 8))      # rows per grid step
    Bp = _round_up(B, NCORES * TB)         # pad so grid divides evenly
    nb_per_core = Bp // (NCORES * TB)

    feat_p = jnp.zeros((Bp, Dp), feature.dtype).at[:B, :D].set(feature)
    cent_p = jnp.zeros((Cp, Dp), centers.dtype).at[:C, :D].set(centers)
    lbl_p = jnp.full((Bp, 1), -1, dtype=jnp.int32).at[:B, 0].set(
        label.astype(jnp.int32))

    cost = pl.CostEstimate(
        flops=2 * Bp * Cp * Dp + 3 * Bp * Dp,
        transcendentals=0,
        bytes_accessed=4 * (Bp * Dp + Cp * Dp + Bp + NCORES * 8 * Dp),
    )

    # NOTE: for very large C*D, either raise vmem_limit_bytes via
    # pltpu.CompilerParams or add a D-chunk grid axis so only a slice of the
    # centers table is resident per step (v7x has 64 MiB VMEM).
    partial = pl.pallas_call(
        _centerloss_kernel,
        out_shape=jax.ShapeDtypeStruct((NCORES * 8, Dp), jnp.float32),
        grid_spec=pltpu.PrefetchScalarGridSpec(
            num_scalar_prefetch=0,
            grid=(NCORES, nb_per_core),
            in_specs=[
                # feature tile: rows [ (c*nb+j)*TB , ... )
                pl.BlockSpec((TB, Dp), lambda c, j: (c * nb_per_core + j, 0)),
                # matching label column
                pl.BlockSpec((TB, 1), lambda c, j: (c * nb_per_core + j, 0)),
                # centers table, VMEM-resident across the whole grid
                pl.BlockSpec((Cp, Dp), lambda c, j: (0, 0)),
            ],
            # per-core lane-dense partial-sum block, resident across j
            out_specs=pl.BlockSpec((8, Dp), lambda c, j: (c, 0)),
        ),
        compiler_params=pltpu.CompilerParams(
            dimension_semantics=("parallel", "arbitrary"),
        ),
        cost_estimate=cost,
    )(feat_p, lbl_p, cent_p)

    # Final scalar reduction + normalization outside the kernel.
    return jnp.sum(partial) / 2.0 / batch_size


if __name__ == "__main__":
    key = jax.random.PRNGKey(0)
    k_feat, k_lbl, k_cent = jax.random.split(key, 3)

    B, D, C = 8, 32, 10          # batch, feature dim, num classes
    feature = jax.random.normal(k_feat, (B, D), dtype=jnp.float32)
    label = jax.random.randint(k_lbl, (B,), 0, C, dtype=jnp.int32)
    # "centers" parameter of the enclosing CenterLoss module: shape (C, D),
    # initialized deterministically in-script (synthetic, no checkpoint load).
    centers = jax.random.normal(k_cent, (C, D), dtype=jnp.float32)
    batch_size = float(B)

    loss = center_loss(feature, label, centers, batch_size)
    loss = jax.block_until_ready(loss)

    # pure-JAX reference check
    ref = jnp.sum((feature - centers[label]) ** 2) / 2.0 / batch_size
    assert jnp.allclose(loss, ref, rtol=1e-5, atol=1e-5), (loss, ref)

    print("KERNEL_OK")
</pallas_src>

<mosaic_0001>
module attributes {stable_mosaic.version = 11 : i64} {
  func.func @_centerloss_kernel(%arg0: i32, %arg1: i32, %arg2: memref<8x128xf32, #tpu.memory_space<vmem>>, %arg3: memref<8x1xi32, #tpu.memory_space<vmem>>, %arg4: memref<128x128xf32, #tpu.memory_space<vmem>>, %arg5: memref<8x128xf32, #tpu.memory_space<vmem>>) attributes {dimension_semantics = [#tpu.dimension_semantics<parallel>, #tpu.dimension_semantics<arbitrary>], iteration_bounds = array<i64: 2, 1>, scalar_prefetch = 0 : i64, scratch_operands = 0 : i64, tpu.core_type = #tpu.core_type<tc>, window_params = [{transform_indices = @transform_0, window_bounds = array<i64: 8, 128>}, {transform_indices = @transform_1, window_bounds = array<i64: 8, 1>}, {pipeline_mode = #tpu.pipeline_mode<synchronous>, transform_indices = @transform_2, window_bounds = array<i64: 128, 128>}, {transform_indices = @transform_3, window_bounds = array<i64: 8, 128>}]} {
    %c0_i32 = arith.constant 0 : i32
    %0 = arith.cmpi eq, %arg1, %c0_i32 : i32
    %1 = arith.extui %0 : i1 to i32
    %c0_i32_0 = arith.constant 0 : i32
    %2 = arith.cmpi ne, %1, %c0_i32_0 : i32
    scf.if %2 {
      %cst_11 = arith.constant 0.000000e+00 : f32
      %19 = vector.broadcast %cst_11 : f32 to vector<8x128xf32>
      %c0_12 = arith.constant 0 : index
      %c0_13 = arith.constant 0 : index
      %20 = vector.load %arg5[%c0_12, %c0_13] : memref<8x128xf32, #tpu.memory_space<vmem>>, vector<8x128xf32>
      tpu.vector_store %arg5[%c0_12, %c0_13], %19 {strides = array<i32>} : memref<8x128xf32, #tpu.memory_space<vmem>>, vector<8x128xf32>,
    } else {
    }
    %c0 = arith.constant 0 : index
    %c0_1 = arith.constant 0 : index
    %3 = vector.load %arg2[%c0, %c0_1] : memref<8x128xf32, #tpu.memory_space<vmem>>, vector<8x128xf32>
    %c0_2 = arith.constant 0 : index
    %c0_3 = arith.constant 0 : index
    %4 = vector.load %arg4[%c0_2, %c0_3] : memref<128x128xf32, #tpu.memory_space<vmem>>, vector<128x128xf32>
    %c0_4 = arith.constant 0 : index
    %c0_5 = arith.constant 0 : index
    %5 = vector.load %arg3[%c0_4, %c0_5] : memref<8x1xi32, #tpu.memory_space<vmem>>, vector<8x1xi32>
    %6 = tpu.iota {dimensions = array<i32: 1>} : vector<8x128xi32>
    %7 = vector.broadcast %5 : vector<8x1xi32> to vector<8x128xi32>
    %8 = arith.cmpi eq, %7, %6 : vector<8x128xi32>
    %9 = arith.extui %8 : vector<8x128xi1> to vector<8x128xi32>
    %10 = arith.sitofp %9 : vector<8x128xi32> to vector<8x128xf32>
    %cst = arith.constant dense<0.000000e+00> : vector<8x128xf32>
    %11 = tpu.matmul %10, %4, %cst {dimension_numbers = #tpu.dot_dimension_numbers<[1], [0], [0], [1], [0, 0, 1, 1], [], []>} : vector<8x128xf32>, vector<128x128xf32>, vector<8x128xf32> -> vector<8x128xf32>
    %12 = arith.subf %3, %11 : vector<8x128xf32>
    %13 = arith.mulf %12, %12 : vector<8x128xf32>
    %c0_6 = arith.constant 0 : index
    %c0_7 = arith.constant 0 : index
    %14 = vector.load %arg5[%c0_6, %c0_7] : memref<8x128xf32, #tpu.memory_space<vmem>>, vector<8x128xf32>
    %15 = vector.shape_cast %13 : vector<8x128xf32> to vector<1x8x128xf32>
    %cst_8 = arith.constant dense<0.000000e+00> : vector<8x128xf32>
    %16 = vector.multi_reduction <add>, %15, %cst_8 [0] : vector<1x8x128xf32> to vector<8x128xf32>
    %17 = arith.addf %14, %16 : vector<8x128xf32>
    %c0_9 = arith.constant 0 : index
    %c0_10 = arith.constant 0 : index
    %18 = vector.load %arg5[%c0_9, %c0_10] : memref<8x128xf32, #tpu.memory_space<vmem>>, vector<8x128xf32>
    tpu.vector_store %arg5[%c0_9, %c0_10], %17 {strides = array<i32>} : memref<8x128xf32, #tpu.memory_space<vmem>>, vector<8x128xf32>,
    return
  }
  func.func @transform_0(%arg0: i32, %arg1: i32) -> (i32, i32) {
    %c1_i32 = arith.constant 1 : i32
    %0 = arith.muli %arg0, %c1_i32 : i32
    %1 = arith.addi %0, %arg1 : i32
    %c0_i32 = arith.constant 0 : i32
    %c0_i32_0 = arith.constant 0 : i32
    return %1, %c0_i32 : i32, i32
  }
  func.func @transform_1(%arg0: i32, %arg1: i32) -> (i32, i32) {
    %c1_i32 = arith.constant 1 : i32
    %0 = arith.muli %arg0, %c1_i32 : i32
    %1 = arith.addi %0, %arg1 : i32
    %c0_i32 = arith.constant 0 : i32
    %c0_i32_0 = arith.constant 0 : i32
    return %1, %c0_i32 : i32, i32
  }
  func.func @transform_2(%arg0: i32, %arg1: i32) -> (i32, i32) {
    %c0_i32 = arith.constant 0 : i32
    %c0_i32_0 = arith.constant 0 : i32
    %c0_i32_1 = arith.constant 0 : i32
    return %c0_i32, %c0_i32_0 : i32, i32
  }
  func.func @transform_3(%arg0: i32, %arg1: i32) -> (i32, i32) {
    %c0_i32 = arith.constant 0 : i32
    %c0_i32_0 = arith.constant 0 : i32
    return %arg0, %c0_i32 : i32, i32
  }
}

</mosaic_0001>

<bundles_post_ra>
// kernel: tpu_custom_call.1
= control target key start
LH: loop header
LB: loop body
LE: loop exit
PB: predicated region body
PF: predicated region fallthrough
CT: control target
= control target key end

     0   :  { %8 = vsyncpa [#allocation3], 0  ;;  %s903_s0 = inlined_call_operand.vmem [shape: f32[16,128], index: 0, kind: input, shape index: {}]   ;;  %s904_s1 = inlined_call_operand.vmem [shape: s32[16,1], index: 1, kind: input, shape index: {}]   ;;  %s905_s2 = inlined_call_operand.hbm [shape: f32[128,128], index: 2, kind: input, shape index: {}]   ;;  %s906_s3 = inlined_call_operand.hbm [shape: f32[16,128], index: 3, kind: output, shape index: {}]  }
   0x1   :  { %9 = vsyncpa [#allocation4], 0 }
   0x2   :  { %11 = vsyncpa [#allocation4 + $0x1], 0  ;;  %s743_s12 = smov 0   ;;  %s745_s13 = smov 0  }
   0x3   :  { %s747_s14 = smov 0   ;;  %s749_s15 = smov 0  }
   0x4   :  { %s751_s16 = smov 0   ;;  %s753_s17 = smov 0  }
   0x5 LB: > { %s436_s18 = sadd.s32 4294967295, %s712_s17   ;;  %s437_s19 = sadd.s32 4294967294, %s712_s17   ;;  %s712_s17 = sphi %s753_s17, %s17_s17   ;;  %s708_s16 = sphi %s751_s16, %s924_s16   ;;  %s704_s15 = sphi %s749_s15, %s923_s15   ;;  %s700_s14 = sphi %s747_s14, %s922_s14   ;;  %s696_s13 = sphi %s745_s13, %s921_s13   ;;  %s692_s12 = sphi %s743_s12, %s920_s12  }
   0x6   : > { %s29_s20 = sadd.s32 1, %s708_s16  ;;  %s113_s21 = sadd.s32 1, %s700_s14 }
   0x7   : > { %p31_p0 = scmp.ge.s32.totalorder %s29_s20, 2  ;;  %p123_p1 = scmp.ne.s32.totalorder %s700_s14, %s696_s13 }
   0x8   : > { %p124_p2 = scmp.eq.s32.totalorder %s436_s18, 1  ;;  %p129_p3 = scmp.ne.s32.totalorder %s696_s13, %s692_s12 }
   0x9   : > { %s926_s20 = smov (%p31_p0, %s29_s20), 0  ;;  %p130_p5 = scmp.eq.s32.totalorder %s437_s19, 1 }
   0xa   : > { %p783_p4 = por %p124_p2, %p123_p1  ;;  %s110_s23 = ssub.s32 %s708_s16, %s926_s20 }
   0xb   : > { %p438_p6 = scmp.ge.s32.totalorder %s712_s17, 1  ;;  %p111_p7 = scmp.eq.s32.totalorder %s110_s23, 0 }
   0xc   : > { %s911_s22 = scalar_select %p783_p4, 1, 0 }
   0xd   : > { %p790_p8 = por %p130_p5, %p129_p3  ;;  %p137_p9 = scmp.lt.s32.totalorder %s712_s17, 3 }
   0xe   : > { %s796_s25 = scalar_select %p111_p7, %s700_s14, %s113_s21  }
   0xf   : > { %s912_s24 = scalar_select %p790_p8, 1, 0 }
  0x10   : > { %p798_p10 = pnand %p438_p6, %p137_p9  ;;  %p802_p11 = scmp.eq.s32.totalorder %s436_s18, 0 }
  0x11   : > { %s714_s28 = smov [#allocation2]   ;;  %s602_s6 = scalar_lea.hbm %s905_s2, 2048 }
  0x12   : > { %s913_s26 = scalar_select %p798_p10, 1, 0 }
  0x13   : > { %s914_s27 = scalar_select %p802_p11, 1, 0 }
  0x14   : > { %p534_p12 = pneg %p798_p10  ;;  %s149_s29 = sshll.u32 %s714_s28, 4  ;;  %s150_s29 = int_to_ptr.vmem [resolvable:$true] %s149_s29 }
  0x15   : > { %p603_p0 = scmp.ne.s32.totalorder %s905_s2, %s602_s6  ;;  %p609_p5 = scmp.lt.u32.totalorder %s602_s6, %s905_s2 }
  0x16   : > { %p810_p13 = pnand %p802_p11, %p534_p12 }
  0x18   : > { %p604_p1 = pneg %p810_p13 }
  0x1a   : > { %p605_p2 = pnand %p604_p1, %p603_p0 }
  0x1c   : > { %p606_p3 = pneg %p605_p2 }
  0x1e   : > { %p611_p6 = pnand %p609_p5, %p606_p3 }
  0x20   : > { %614 = shalt.err (!%p611_p6)
}
  0x21   : > { %s615_s11 = scalar_lea.vmem %s150_s29, 2048  ;;  %p623_p8 = scmp.lt.s32.totalorder %s150_s29, %s150_s29 }
  0x22   : > { %p616_p7 = scmp.ne.s32.totalorder %s150_s29, %s615_s11  ;;  %p624_p4 = scmp.lt.s32.totalorder %s615_s11, %s615_s11 }
  0x24   : > { %p618_p9 = pnand %p616_p7, %p604_p1  ;;  %p625_p11 = por %p624_p4, %p623_p8 }
  0x26   : > { %p619_p12 = pneg %p618_p9 }
  0x28   : > { %p626_p10 = pnand %p625_p11, %p619_p12 }
  0x2a   : > { %629 = shalt.err (!%p626_p10)
}
  0x2b   : > { %s715_s18 = smov 128   ;;  %s716_s19 = smov 8  }
  0x2c   : > { %537 = dma.hbm_to_vmem [thread:$0]  (!%p810_p13), %s905_s2, 2048, %s150_s29, [#allocation3], %s715_s18, %s715_s18, %s716_s19  }
  0x2d   : > { %p916_p0 = scmp.ne.s32.totalorder %s913_s26, 0 }
  0x2e   : > { %p917_p2 = scmp.ne.s32.totalorder (!%p916_p0), %s914_s27, 0 }
  0x2f   : > { %183 = sbr.rel (%p916_p0) target bundleno = 421 (0x1a5), region = 32 }
  0x36   : > { %683 = dma.done.wait (%p917_p2), [#allocation3], 2048  }
  0x37   : > { %685 = vsyncadd (%p917_p2), [#allocation3], 4294965248  ;;  %p213_p4 = scmp.lt.s32.totalorder %s704_s15, 1  ;;  %v717_v0 = vmov 0   ;;  %v718_v1 = vmov 0.0|0.0   ;;  %v230_v3 = vld [vmem:[#allocation2] sm:$0xff]  ;;  %v247_v28 = vlaneseq }
  0x38   : > { %601 = vset.pattern.permute.xlu0 %v717_v0  ;;  %504 = vmatprep.subr.bf16.mxu0 %v718_v1  ;;  %v231_v4 = vld [vmem:[#allocation2 + $0x8] sm:$0xff]  ;;  %v232_v6 = vld [vmem:[#allocation2 + $0x10] sm:$0xff]  ;;  %v233_v7 = vld [vmem:[#allocation2 + $0x18] sm:$0xff]  ;;  %vm719_vm0 = vmmov 0   ;;  %v720_v8 = vmov 0.0   ;;  %v721_v31 = vmov 1.0  }
  0x39   : > { %s838_s28 = scalar_select %p213_p4, %s704_s15, 1  ;;  %v505_v5 = vpack.c.bf16 %v231_v4, %v230_v3  ;;  %501 = vmatprep.mubr.msk.f32.mxu0 %vm719_vm0, %v720_v8  ;;  %v508_v9 = vpack.c.bf16 %v233_v7, %v232_v6  ;;  %v234_v10 = vld [vmem:[#allocation2 + $0x20] sm:$0xff]  ;;  %v235_v11 = vld [vmem:[#allocation2 + $0x28] sm:$0xff]  ;;  %v236_v13 = vld [vmem:[#allocation2 + $0x30] sm:$0xff]  ;;  %v248_v29 = vand.u32 127, %v247_v28 }
  0x3a   : > { %v511_v12 = vpack.c.bf16 %v235_v11, %v234_v10  ;;  %v237_v14 = vld [vmem:[#allocation2 + $0x38] sm:$0xff]  ;;  %v238_v16 = vld [vmem:[#allocation2 + $0x40] sm:$0xff]  ;;  %v239_v17 = vld [vmem:[#allocation2 + $0x48] sm:$0xff]  ;;  %s209_s27 = sand.u32 1, %s696_s13   ;;  %s449_s9 = sshll.u32 %s704_s15, 7 }
  0x3b   : > { %s444_s29 = sshll.u32 %s838_s28, 3  ;;  %506 = vmatpush3.bf16.msra.mxu0 %v505_v5  ;;  %v514_v15 = vpack.c.bf16 %v237_v14, %v236_v13  ;;  %v517_v18 = vpack.c.bf16 %v239_v17, %v238_v16  ;;  %v240_v19 = vld [vmem:[#allocation2 + $0x50] sm:$0xff]  ;;  %v241_v20 = vld [vmem:[#allocation2 + $0x58] sm:$0xff]  ;;  %v242_v22 = vld [vmem:[#allocation2 + $0x60] sm:$0xff]  ;;  %s443_s8 = sshll.u32 %s209_s27, 3 }
  0x3c   : > { %s222_s4 = scalar_lea.vmem %s904_s1, %s444_s29  ;;  %507 = vmatprep.subr.bf16.mxu0 %v718_v1  ;;  %v520_v21 = vpack.c.bf16 %v241_v20, %v240_v19  ;;  %v243_v23 = vld [vmem:[#allocation2 + $0x68] sm:$0xff]  ;;  %v244_v25 = vld [vmem:[#allocation2 + $0x70] sm:$0xff]  ;;  %v245_v26 = vld [vmem:[#allocation2 + $0x78] sm:$0xff]  ;;  %s216_s7 = scalar_lea.vmem %s903_s0, %s444_s29 }
  0x3d   : > { %v246_v2 = vld [vmem:[%s222_s4] sm:$0xff]  ;;  %v523_v24 = vpack.c.bf16 %v243_v23, %v242_v22  ;;  %v526_v27 = vpack.c.bf16 %v245_v26, %v244_v25  ;;  %s211_s10 = scalar_lea.vmem [#allocation5], %s443_s8  ;;  %s856_s21 = scalar_lea.hbm %s906_s3, %s449_s9 }
  0x3e   : > { %250 = vperm.xlu0 %601, %v246_v2   ;;  %v229_v32 = vld [vmem:[%s216_s7] sm:$0xff]  ;;  %s345_s11 = sshll.u32 %s211_s10, 4  ;;  %s332_s23 = scalar_lea.sflag [#allocation4], %s209_s27  ;;  %s858_s11 = int_to_ptr.vmem [resolvable:$true] %s345_s11 }
  0x3f   : > { %509 = vmatpush3.bf16.msra.mxu0 %v508_v9  ;;  %s630_s28 = scalar_lea.vmem %s858_s11, 128  ;;  %p918_p10 = scmp.ne.s32.totalorder %s911_s22, 0 }
  0x40   : > { %510 = vmatprep.subr.bf16.mxu0 %v718_v1  ;;  %p631_p8 = scmp.ne.s32.totalorder %s858_s11, %s630_s28  ;;  %s722_s15 = smov [#allocation5]  }
  0x41   : > { %s634_s29 = sshll.u32 %s722_s15, 4  ;;  %s635_s29 = int_to_ptr.vmem [resolvable:$false] %s634_s29 }
  0x42   : > { %p632_p11 = pnand %p631_p8, %p918_p10  ;;  %s636_s26 = scalar_lea.vmem %s635_s29, 256 }
  0x43   : > { %512 = vmatpush3.bf16.msra.mxu0 %v511_v12  ;;  %p637_p1 = scmp.lt.s32.totalorder %s858_s11, %s635_s29  ;;  %p638_p3 = scmp.lt.s32.totalorder %s636_s26, %s630_s28 }
  0x44   : > { %513 = vmatprep.subr.bf16.mxu0 %v718_v1  ;;  %p633_p13 = pneg %p632_p11 }
  0x45   : > { %p639_p5 = por %p638_p3, %p637_p1 }
  0x47   : > { %515 = vmatpush3.bf16.msra.mxu0 %v514_v15  ;;  %p640_p6 = pnand %p639_p5, %p633_p13 }
  0x48   : > { %516 = vmatprep.subr.bf16.mxu0 %v718_v1 }
  0x4b   : > { %518 = vmatpush3.bf16.msra.mxu0 %v517_v18 }
  0x4c   : > { %519 = vmatprep.subr.bf16.mxu0 %v718_v1 }
  0x4f   : > { %521 = vmatpush3.bf16.msra.mxu0 %v520_v21 }
  0x50   : > { %522 = vmatprep.subr.bf16.mxu0 %v718_v1 }
  0x53   : > { %524 = vmatpush3.bf16.msra.mxu0 %v523_v24 }
  0x54   : > { %525 = vmatprep.subr.bf16.mxu0 %v718_v1 }
  0x57   : > { %527 = vmatpush3.bf16.msra.mxu0 %v526_v27 }
  0xbd   : > { %v251_v30 = vpop.permute.xlu0 %250 }
  0xbe   : > { %vm252_vm1 = vcmp.eq.s32.totalorder %v251_v30, %v248_v29 }
  0xbf   : > { %502 = vmatmul.mubr.msk.f32.vlgmr.msra.gmra.mrb[0].mxu0 %vm252_vm1, %v721_v31 }
 0x192   : > { %v321_v33 = vpop.f32.mrb[0].mxu0 }
 0x193   : > { %v325_v34 = vsub.f32 %v229_v32, %v321_v33  ;;  %v503_v35 = vpop.f32.mrb[1].mxu0 }
 0x195   : > { %v326_v36 = vmul.f32 %v325_v34, %v325_v34 }
 0x197   : > { %330 = vst [vmem:[%s211_s10] sm:$0xff] %v326_v36 }
 0x198   : > { %643 = shalt.err (!%p640_p6)
}
 0x199   : > { %s644_s30 = scalar_lea.hbm %s856_s21, 128  ;;  %s648_s5 = scalar_lea.hbm %s906_s3, 256 }
 0x19a   : > { %p645_p7 = scmp.ne.s32.totalorder %s856_s21, %s644_s30  ;;  %p649_p0 = scmp.lt.u32.totalorder %s856_s21, %s906_s3 }
 0x19b   : > { %p650_p2 = scmp.lt.u32.totalorder %s648_s5, %s644_s30  ;;  %p652_p8 = scmp.lt.u32.totalorder %s644_s30, %s856_s21 }
 0x19c   : > { %p646_p9 = pnand %p645_p7, %p918_p10 }
 0x19d   : > { %p651_p4 = por %p650_p2, %p649_p0 }
 0x19e   : > { %p647_p12 = pneg %p646_p9 }
 0x19f   : > { %p653_p11 = por %p652_p8, %p651_p4 }
 0x1a1   : > { %p654_p13 = pnand %p653_p11, %p647_p12 }
 0x1a3   : > { %657 = shalt.err (!%p654_p13)
}
 0x1a4   : > { %532 = dma.vmem_to_hbm [thread:$0]  (%p918_p10), %s858_s11, 128, %s856_s21, %s332_s23  }
 0x1a5 PF: > { %p544_p1 = scmp.ge.s32.totalorder %s712_s17, 2  ;;  %s357_s8 = sand.u32 1, %s692_s12  }
 0x1a6   : > { %p919_p3 = scmp.ne.s32.totalorder %s912_s24, 0  ;;  %s358_s9 = scalar_lea.sflag [#allocation4], %s357_s8 }
 0x1a8   : > { %p539_p5 = pnand %p544_p1, %p919_p3 }
 0x1aa   : > { %687 = dma.done.wait (!%p539_p5), %s358_s9, 128  }
 0x1ab   : > { %689 = vsyncadd (!%p539_p5), %s358_s9, 4294967168  ;;  %s17_s17 = sadd.s32 1, %s712_s17   ;;  %s920_s12 = smov %s696_s13 }
 0x1ac   : > { %p14_p6 = scmp.ge.s32.totalorder %s17_s17, 4   ;;  %s921_s13 = smov %s700_s14 }
 0x1ad   : > { %s922_s14 = smov %s796_s25  ;;  %s923_s15 = smov %s708_s16 }
 0x1ae   : > { %s924_s16 = smov %s926_s20  ;;  %16 = sbr.rel (!%p14_p6) target bundleno = 5 (0x5), region = 79 }
 0x1b5   :  { %363 = vsyncpa [#allocation3], 1 }
 0x1b6   :  { %365 = vsyncpa [#allocation3 + $0x1], 1 }
 0x1b7   :  { %366 = vsyncpa [#allocation4], 1 }
 0x1b8   :  { %368 = vsyncpa [#allocation4 + $0x1], 1 }

</bundles_post_ra>
